<compile_context>
chip_gen: v7x
topology: tpu7x:2x2x1
jax: 0.10.0
libtpu: 0.0.40
codegen_flags: <defaults>
</compile_context>

<pallas_src>
import functools

import jax
import jax.numpy as jnp
from jax.experimental import pallas as pl
from jax.experimental.pallas import tpu as pltpu


def _round_up(x: int, m: int) -> int:
    return ((x + m - 1) // m) * m


def _embed_lookup_kernel(ids_ref, w_ref, o_ref, *, vocab: int):
    """One grid step: one_hot(ids) @ table for a (TN,) slab of rows."""
    ids = ids_ref[...]                                            # (TN, 1) int32
    tn = ids.shape[0]
    lane_ids = jax.lax.broadcasted_iota(jnp.int32, (tn, vocab), 1)
    onehot = (lane_ids == ids).astype(w_ref.dtype)                # (TN, vocab)
    o_ref[...] = jnp.dot(
        onehot, w_ref[...], preferred_element_type=jnp.float32
    ).astype(o_ref.dtype)


def feat_embedding_pallas(ids, table, *, num_classes: int, mult: int,
                          tile_n: int = 512):
    """ids [..., mult] int -> [..., mult, embed_dim] via Pallas one-hot matmul."""
    *lead, m = ids.shape
    assert m == mult, f"{ids.shape},{mult}"
    vocab, embed_dim = table.shape
    assert vocab == mult * num_classes, (vocab, mult, num_classes)

    offsets = jnp.arange(mult, dtype=jnp.int32) * num_classes     # [mult]
    flat = (ids.astype(jnp.int32) + offsets).reshape(-1)          # (N,)
    n = flat.shape[0]

    # Large row tiles (perf feedback); pad instead of asserting divisibility.
    tile_n = max(8, min(tile_n, _round_up(n, 8)))
    n_pad = _round_up(n, tile_n)
    if n_pad != n:
        flat = jnp.concatenate([flat, jnp.zeros((n_pad - n,), dtype=jnp.int32)])
    flat = flat.reshape(n_pad, 1)                                 # column of ids

    grid = (n_pad // tile_n,)
    out = pl.pallas_call(
        functools.partial(_embed_lookup_kernel, vocab=vocab),
        out_shape=jax.ShapeDtypeStruct((n_pad, embed_dim), table.dtype),
        grid=grid,
        in_specs=[
            pl.BlockSpec((tile_n, 1), lambda i: (i, 0)),          # indices slab
            pl.BlockSpec((vocab, embed_dim), lambda i: (0, 0)),   # full table
        ],
        out_specs=pl.BlockSpec((tile_n, embed_dim), lambda i: (i, 0)),
        compiler_params=pltpu.CompilerParams(
            dimension_semantics=("parallel",)),
        cost_estimate=pl.CostEstimate(
            flops=2 * n_pad * vocab * embed_dim,
            transcendentals=0,
            bytes_accessed=4 * (n_pad + vocab * embed_dim + n_pad * embed_dim)),
    )(flat, table)

    return out[:n].reshape(*lead, mult, embed_dim)


class FeatEmbedding:
    """JAX/Pallas port of the torch FeatEmbedding module (one-hot embedding)."""

    def __init__(self, num_classes: int, embed_dim: int, mult: int = 1, *,
                 key=None, dtype=jnp.float32):
        self.num_classes, self.embed_dim, self.mult = num_classes, embed_dim, mult
        key = key if key is not None else jax.random.PRNGKey(0)
        # nn.Embedding default init: N(0, 1)
        self.weight = jax.random.normal(
            key, (mult * num_classes, embed_dim), dtype=dtype)

    @property
    def embedding_dim(self) -> int:
        """flattened shape of embedding"""
        return self.mult * self.embed_dim

    def get_offsets(self):
        """values to shift bins by for case of multiple embeddings"""
        return jnp.arange(self.mult, dtype=jnp.int32) * self.num_classes

    def __call__(self, to_emb):
        assert to_emb.shape[-1] == self.mult, f"{to_emb.shape},{self.mult}"
        # TODO(synk): torch's runtime min/max-token asserts have no traced-JAX
        # equivalent; they are checked here only for concrete inputs.
        try:
            shifted = to_emb + self.get_offsets()
            assert int(jnp.min(shifted)) >= 0, "negative token"
            assert int(jnp.max(shifted)) < self.mult * self.num_classes, "token overflow"
        except jax.errors.ConcretizationTypeError:
            pass  # traced under jit; skip the concrete-value check
        return feat_embedding_pallas(
            to_emb, self.weight, num_classes=self.num_classes, mult=self.mult)


if __name__ == "__main__":
    # Small, module-consistent shapes: batch=2, seq=8, mult=2 index columns,
    # num_classes=21 (protein alphabet-ish), embed_dim=128 (lane-dense output).
    num_classes, embed_dim, mult = 21, 128, 2
    B, S = 2, 8

    key = jax.random.PRNGKey(0)
    k_idx, k_w = jax.random.split(key)
    ids = jax.random.randint(k_idx, (B, S, mult), 0, num_classes, dtype=jnp.int32)

    mod = FeatEmbedding(num_classes, embed_dim, mult, key=k_w)
    y = jax.block_until_ready(mod(ids))

    # Shape checks: [..., mult, embed_dim] and flattened embedding_dim.
    assert y.shape == (B, S, mult, embed_dim), y.shape
    assert mod.embedding_dim == mult * embed_dim

    # Numerical check against a pure-JAX reference of torch's
    # embedding(to_emb + offsets).
    ref = jnp.take(mod.weight, ids + mod.get_offsets(), axis=0)
    assert jnp.allclose(y, ref, atol=1e-5, rtol=1e-5), float(
        jnp.max(jnp.abs(y - ref)))

    print("KERNEL_OK")
</pallas_src>

<mosaic_0001>
module attributes {stable_mosaic.version = 11 : i64} {
  func.func @_embed_lookup_kernel(%arg0: i32, %arg1: memref<32x1xi32, #tpu.memory_space<vmem>>, %arg2: memref<42x128xf32, #tpu.memory_space<vmem>>, %arg3: memref<32x128xf32, #tpu.memory_space<vmem>>) attributes {dimension_semantics = [#tpu.dimension_semantics<parallel>], iteration_bounds = array<i64: 1>, scalar_prefetch = 0 : i64, scratch_operands = 0 : i64, tpu.core_type = #tpu.core_type<tc>, window_params = [{transform_indices = @transform_0, window_bounds = array<i64: 32, 1>}, {pipeline_mode = #tpu.pipeline_mode<synchronous>, transform_indices = @transform_1, window_bounds = array<i64: 42, 128>}, {transform_indices = @transform_2, window_bounds = array<i64: 32, 128>}]} {
    %c0 = arith.constant 0 : index
    %c0_0 = arith.constant 0 : index
    %0 = vector.load %arg1[%c0, %c0_0] : memref<32x1xi32, #tpu.memory_space<vmem>>, vector<32x1xi32>
    %1 = tpu.iota {dimensions = array<i32: 1>} : vector<32x42xi32>
    %2 = vector.broadcast %0 : vector<32x1xi32> to vector<32x42xi32>
    %3 = arith.cmpi eq, %1, %2 : vector<32x42xi32>
    %4 = arith.extui %3 : vector<32x42xi1> to vector<32x42xi32>
    %5 = arith.sitofp %4 : vector<32x42xi32> to vector<32x42xf32>
    %c0_1 = arith.constant 0 : index
    %c0_2 = arith.constant 0 : index
    %6 = vector.load %arg2[%c0_1, %c0_2] : memref<42x128xf32, #tpu.memory_space<vmem>>, vector<42x128xf32>
    %cst = arith.constant dense<0.000000e+00> : vector<32x128xf32>
    %7 = tpu.matmul %5, %6, %cst {dimension_numbers = #tpu.dot_dimension_numbers<[1], [0], [0], [1], [0, 0, 1, 1], [], []>} : vector<32x42xf32>, vector<42x128xf32>, vector<32x128xf32> -> vector<32x128xf32>
    %c0_3 = arith.constant 0 : index
    %c0_4 = arith.constant 0 : index
    %8 = vector.load %arg3[%c0_3, %c0_4] : memref<32x128xf32, #tpu.memory_space<vmem>>, vector<32x128xf32>
    tpu.vector_store %arg3[%c0_3, %c0_4], %7 {strides = array<i32>} : memref<32x128xf32, #tpu.memory_space<vmem>>, vector<32x128xf32>,
    return
  }
  func.func @transform_0(%arg0: i32) -> (i32, i32) {
    %c0_i32 = arith.constant 0 : i32
    %c0_i32_0 = arith.constant 0 : i32
    return %arg0, %c0_i32 : i32, i32
  }
  func.func @transform_1(%arg0: i32) -> (i32, i32) {
    %c0_i32 = arith.constant 0 : i32
    %c0_i32_0 = arith.constant 0 : i32
    %c0_i32_1 = arith.constant 0 : i32
    return %c0_i32, %c0_i32_0 : i32, i32
  }
  func.func @transform_2(%arg0: i32) -> (i32, i32) {
    %c0_i32 = arith.constant 0 : i32
    %c0_i32_0 = arith.constant 0 : i32
    return %arg0, %c0_i32 : i32, i32
  }
}

</mosaic_0001>

<bundles_post_ra>
// kernel: tpu_custom_call.1
= control target key start
LH: loop header
LB: loop body
LE: loop exit
PB: predicated region body
PF: predicated region fallthrough
CT: control target
= control target key end

     0   :  { %7 = vsyncpa [#allocation3], 0  ;;  %s363_s0 = inlined_call_operand.vmem [shape: s32[32,1], index: 0, kind: input, shape index: {}]   ;;  %s364_s1 = inlined_call_operand.hbm [shape: f32[42,128], index: 1, kind: input, shape index: {}]   ;;  %s365_s2 = inlined_call_operand.hbm [shape: f32[32,128], index: 2, kind: output, shape index: {}]  }
   0x1   :  { %8 = vsyncpa [#allocation4], 0  ;;  %s299_s9 = smov [#allocation2]   ;;  %s251_s13 = scalar_lea.hbm %s364_s1, 768 }
   0x2   :  { %s16_s10 = sshll.u32 %s299_s9, 4  ;;  %p252_p0 = scmp.ne.s32.totalorder %s364_s1, %s251_s13  ;;  %s17_s10 = int_to_ptr.vmem [resolvable:$true] %s16_s10 }
   0x3   :  { %p255_p1 = scmp.lt.u32.totalorder %s251_s13, %s364_s1 }
   0x5   :  { %p257_p2 = pnand %p255_p1, %p252_p0 }
   0x7   :  { %260 = shalt.err (!%p257_p2)
}
   0x8   :  { %s261_s18 = scalar_lea.vmem %s17_s10, 768  ;;  %p266_p4 = scmp.lt.s32.totalorder %s17_s10, %s17_s10 }
   0x9   :  { %p262_p3 = scmp.ne.s32.totalorder %s17_s10, %s261_s18  ;;  %p267_p5 = scmp.lt.s32.totalorder %s261_s18, %s261_s18 }
   0xb   :  { %p268_p6 = por %p267_p5, %p266_p4 }
   0xd   :  { %p269_p7 = pnand %p268_p6, %p262_p3 }
   0xf   :  { %272 = shalt.err (!%p269_p7)
}
  0x10   :  { %s300_s19 = smov 128   ;;  %s301_s20 = smov 8  }
  0x11   :  { %22 = dma.hbm_to_vmem [thread:$0]  %s364_s1, 768, %s17_s10, [#allocation3], %s300_s19, %s300_s19, %s301_s20  }
  0x12   :  { %295 = dma.done.wait [#allocation3], 768  }
  0x13   :  { %296 = vsyncadd [#allocation3], 4294966528  ;;  %v302_v0 = vmov 0   ;;  %v27_v1 = vld [vmem:[%s363_s0 + $0x8] sm:$0xff]  ;;  %v26_v2 = vld [vmem:[%s363_s0] sm:$0xff]  ;;  %vm75_vm0 = vcmask 1041408   ;;  %v30_v14 = vlaneseq }
  0x14   :  { %250 = vset.pattern.permute.xlu1 %v302_v0  ;;  %249 = vset.pattern.permute.xlu0 %v302_v0  ;;  %v29_v3 = vld [vmem:[%s363_s0 + $0x18] sm:$0xff]  ;;  %v56_v4 = vld [vmem:[#allocation2] sm:$0xff]  ;;  %v57_v5 = vld [vmem:[#allocation2 + $0x8] sm:$0xff]  ;;  %vm303_vm1 = vmmov 1   ;;  %vm62_vm3 = vcmask 343040   ;;  %v304_v18 = vmov 0.0  }
  0x15   :  { %36 = vperm.xlu1 %250, %v27_v1   ;;  %33 = vperm.xlu0 %249, %v26_v2   ;;  %v28_v6 = vld [vmem:[%s363_s0 + $0x10] sm:$0xff]  ;;  %v222_v7 = vpack.c.bf16 %v57_v5, %v56_v4  ;;  %v59_v9 = vld [vmem:[#allocation2 + $0x18] sm:$0xff]  ;;  %v60_v11 = vld [vmem:[#allocation2 + $0x20] sm:$0xff]  ;;  %v31_v15 = vand.u32 127, %v30_v14  ;;  %s305_s0 = smov [#allocation5]  }
  0x16   :  { %v58_v8 = vld [vmem:[#allocation2 + $0x10] sm:$0xff]  ;;  %v61_v12 = vld [vmem:[#allocation2 + $0x28] sm:$0x3]  ;;  %vm231_vm2 = vmpackc.low %vm75_vm0, %vm303_vm1  ;;  %s173_s30 = sshll.u32 %s305_s0, 4  ;;  %s174_s30 = int_to_ptr.vmem [resolvable:$true] %s173_s30 }
  0x17   :  { %v226_v10 = vpack.c.bf16 %v59_v9, %v58_v8  ;;  %223 = vmatprep.subr.bf16.mxu0 %v222_v7  ;;  %236 = vmatprep.subr.bf16.mxu1 %v222_v7  ;;  %v230_v13 = vpack.c.bf16 %v61_v12, %v60_v11  ;;  %s273_s3 = scalar_lea.vmem %s174_s30, 512  ;;  %p278_p9 = scmp.lt.s32.totalorder %s174_s30, %s174_s30 }
  0x18   :  { %225 = vmatpush3.bf16.msra.mxu0 %v222_v7  ;;  %239 = vmatpush3.bf16.msra.mxu1 %v222_v7  ;;  %p274_p8 = scmp.ne.s32.totalorder %s174_s30, %s273_s3  ;;  %p279_p10 = scmp.lt.s32.totalorder %s273_s3, %s273_s3 }
  0x19   :  { %42 = vperm.xlu1 %250, %v29_v3   ;;  %39 = vperm.xlu0 %249, %v28_v6  }
  0x1a   :  { %227 = vmatprep.subr.bf16.mxu0 %v226_v10  ;;  %237 = vmatprep.subr.bf16.mxu1 %v226_v10  ;;  %p280_p11 = por %p279_p10, %p278_p9 }
  0x1c   :  { %229 = vmatpush3.bf16.msra.mxu0 %v226_v10  ;;  %240 = vmatpush3.bf16.msra.mxu1 %v226_v10  ;;  %p281_p12 = pnand %p280_p11, %p274_p8 }
  0x1d   :  { %232 = vmatprep.subr.msk.bf16.mxu0 %vm231_vm2, %v230_v13  ;;  %238 = vmatprep.subr.msk.bf16.mxu1 %vm231_vm2, %v230_v13 }
  0x20   :  { %235 = vmatpush3.bf16.msk.msra.mxu0 %vm231_vm2, %v230_v13  ;;  %241 = vmatpush3.bf16.msk.msra.mxu1 %vm231_vm2, %v230_v13 }
  0x94   :  { %v37_v16 = vpop.permute.xlu1 %36  ;;  %v34_v17 = vpop.permute.xlu0 %33 }
  0x95   :  { %vm45_vm4 = vcmp.eq.s32.totalorder %v31_v15, %v37_v16  ;;  %vm44_vm5 = vcmp.eq.s32.totalorder %v31_v15, %v34_v17 }
  0x96   :  { %v186_v19 = vsel %vm45_vm4, 1.0, %v304_v18  ;;  %v185_v20 = vsel %vm44_vm5, 1.0, %v304_v18 }
  0x97   :  { %216 = vmatprep.mubr.msk.f32.mxu0 %vm62_vm3, %v185_v20 }
  0x98   :  { %v43_v21 = vpop.permute.xlu1 %42  ;;  %217 = vmatmul.mubr.msk.f32.vlgmr.msra.gmra.mrb[0].mxu0 %vm62_vm3, %v186_v19  ;;  %v40_v22 = vpop.permute.xlu0 %39 }
  0x99   :  { %vm47_vm6 = vcmp.eq.s32.totalorder %v31_v15, %v43_v21  ;;  %vm46_vm7 = vcmp.eq.s32.totalorder %v31_v15, %v40_v22 }
  0x9a   :  { %v188_v23 = vsel %vm47_vm6, 1.0, %v304_v18  ;;  %v187_v24 = vsel %vm46_vm7, 1.0, %v304_v18 }
  0x9b   :  { %219 = vmatprep.mubr.msk.f32.mxu1 %vm62_vm3, %v187_v24 }
  0x9c   :  { %220 = vmatmul.mubr.msk.f32.vlgmr.msra.gmra.mrb[0].mxu1 %vm62_vm3, %v188_v23 }
 0x16b   :  { %v218_v25 = vpop.f32.mrb[0].mxu0 }
 0x16c   :  { %165 = vst [vmem:[#allocation5 + $0x8] sm:$0xff] %v218_v25  ;;  %v145_v26 = vpop.f32.mrb[1].mxu0 }
 0x16d   :  { %164 = vst [vmem:[#allocation5] sm:$0xff] %v145_v26 }
 0x16f   :  { %v221_v27 = vpop.f32.mrb[0].mxu1 }
 0x170   :  { %167 = vst [vmem:[#allocation5 + $0x18] sm:$0xff] %v221_v27  ;;  %v155_v28 = vpop.f32.mrb[1].mxu1 }
 0x171   :  { %166 = vst [vmem:[#allocation5 + $0x10] sm:$0xff] %v155_v28 }
 0x172   :  { %284 = shalt.err (!%p281_p12)
}
 0x173   :  { %s285_s6 = scalar_lea.hbm %s365_s2, 512 }
 0x174   :  { %p286_p13 = scmp.ne.s32.totalorder %s365_s2, %s285_s6  ;;  %p289_p0 = scmp.lt.u32.totalorder %s285_s6, %s365_s2 }
 0x176   :  { %p291_p1 = pnand %p289_p0, %p286_p13 }
 0x178   :  { %294 = shalt.err (!%p291_p1)
}
 0x179   :  { %179 = dma.vmem_to_hbm [thread:$0]  %s174_s30, 512, %s365_s2, [#allocation4], %s300_s19, %s300_s19, %s301_s20  }
 0x17a   :  { %297 = dma.done.wait [#allocation4], 512  }
 0x17b   :  { %298 = vsyncadd [#allocation4], 4294966784 }
 0x17c   :  { %183 = vsyncpa [#allocation3], 1 }
 0x17d   :  { %184 = vsyncpa [#allocation4], 1 }

</bundles_post_ra>
